<compile_context>
chip_gen: v7x
topology: tpu7x:2x2x1
jax: 0.10.0
libtpu: 0.0.40
codegen_flags: <defaults>
</compile_context>

<pallas_src>
import functools

import jax
import jax.numpy as jnp
from jax.experimental import pallas as pl
from jax.experimental.pallas import tpu as pltpu

FP = 128  # padded feature / lane width used throughout the fused heads


# ----------------------------------------------------------------------------
# Fused kernel: encoder (1x1 conv, bias folded) -> ReLU -> avg-pool (matmul
# with precomputed pooling rows, accumulated over BHW tiles) -> classifier +
# two discriminator blocks on the final grid step.
# ----------------------------------------------------------------------------
def dafl_fused_kernel(x_ref, pool_ref, wenc_ref, w_slab_ref, b_slab_ref,
                      out_ref, acc_ref):
    # x_ref:      [tile, C+1]   spatial-major input tile, constant-1 last col
    # pool_ref:   [BP, tile]    row-form pooling matrix tile (entries 1/HW)
    # wenc_ref:   [C+1, FP]     stand-in encoder weight with bias row folded in
    # w_slab_ref: [3*FP, FP]    fused head weights (W1 | W2 | W3 on sublanes)
    # b_slab_ref: [8, FP]       fused head biases  (rows 0..2 = b1, b2, b3)
    # out_ref:    [BP, FP]      packed output rows: [cl | live | spoof | 0-pad]
    # acc_ref:    [BP, FP]      VMEM feats accumulator (persists across grid)
    t = pl.program_id(0)

    @pl.when(t == 0)
    def _():
        acc_ref[...] = jnp.zeros_like(acc_ref)

    # ---- stand-in encoder: 1x1 conv (C -> F) with bias folded into the
    #      matmul via the constant-1 input column; ReLU on the VPU.
    h = jnp.maximum(
        jnp.dot(x_ref[...], wenc_ref[...], preferred_element_type=jnp.float32),
        0.0)                                                   # [tile, FP]

    # ---- partial adaptive average pool: accumulate pooled feats over tiles.
    acc_ref[...] += jnp.dot(pool_ref[...], h,
                            preferred_element_type=jnp.float32)  # [BP, FP]

    # ---- fused heads on the final step only (feats fully accumulated).
    @pl.when(t == pl.num_programs(0) - 1)
    def _():
        fp = out_ref.shape[1]
        feats = acc_ref[...]                                   # [BP, FP]
        # NOTE: padded batch rows b >= B hold zero feats; they pick up
        # ReLU(bias) garbage through the head chain and are sliced away in
        # the wrapper.  Do not reduce over the packed output tile directly.
        w1 = w_slab_ref[0:fp, :]
        w2 = w_slab_ref[fp:2 * fp, :]
        w3 = w_slab_ref[2 * fp:3 * fp, :]
        b1 = b_slab_ref[0:1, :]
        b2 = b_slab_ref[1:2, :]
        b3 = b_slab_ref[2:3, :]

        h1 = jnp.maximum(
            jnp.dot(feats, w1, preferred_element_type=jnp.float32) + b1, 0.0)
        h2 = jnp.maximum(
            jnp.dot(h1, w2, preferred_element_type=jnp.float32) + b2, 0.0)
        out_ref[...] = jnp.dot(h2, w3, preferred_element_type=jnp.float32) + b3


def _pick_bhw_tile(bhw, target=256):
    """Largest multiple-of-128 divisor of bhw that is <= target.

    Falls back to the full extent (single grid step) if none exists, which is
    always a legal block (full-array dims).  For production feature maps use
    target ~2048-8192 so the x-tile DMA overlaps compute while staying well
    under v7x's scoped VMEM limit.
    """
    t = min(bhw, target)
    t -= t % 128
    while t >= 128:
        if bhw % t == 0:
            return t
        t -= 128
    return bhw


@functools.partial(jax.jit, static_argnums=(3,))
def dafl_fas_forward(x_nchw, packed, pool_rows, num_domains):
    B, C, H, W = x_nchw.shape
    bhw = B * H * W
    bp = pool_rows.shape[0]  # sublane-padded batch rows (multiple of 8)

    # Spatial-major layout + constant-1 column so the encoder bias rides the
    # first matmul.  Rows are ordered batch-major so pool_rows maps positions
    # b*HW .. (b+1)*HW-1 to batch b.
    x_flat = jnp.transpose(x_nchw, (0, 2, 3, 1)).reshape(bhw, C)
    x_aug = jnp.concatenate([x_flat, jnp.ones((bhw, 1), x_flat.dtype)], axis=1)

    tile = _pick_bhw_tile(bhw)
    grid = (bhw // tile,)

    out = pl.pallas_call(
        dafl_fused_kernel,
        out_shape=jax.ShapeDtypeStruct((bp, FP), jnp.float32),
        grid=grid,
        in_specs=[
            # x tile marches along the BHW axis.
            pl.BlockSpec((tile, C + 1), lambda t: (t, 0)),
            # matching pooling-matrix tile.
            pl.BlockSpec((bp, tile), lambda t: (0, t)),
            # weights: constant block index -> DMA'd once, stay resident.
            pl.BlockSpec((C + 1, FP), lambda t: (0, 0)),
            pl.BlockSpec((3 * FP, FP), lambda t: (0, 0)),
            pl.BlockSpec((8, FP), lambda t: (0, 0)),
        ],
        out_specs=pl.BlockSpec((bp, FP), lambda t: (0, 0)),
        scratch_shapes=[pltpu.VMEM((bp, FP), jnp.float32)],
        compiler_params=pltpu.CompilerParams(
            # single grid axis is the pooling reduction -> "arbitrary".
            dimension_semantics=("arbitrary",)),
    )(x_aug, pool_rows, packed["wenc_aug"], packed["w_slab"], packed["b_slab"])

    d = num_domains
    cl_out = out[:B, 0:1]
    live_out = out[:B, 1:1 + d]
    spoof_out = out[:B, 1 + d:1 + 2 * d]
    return cl_out, live_out, spoof_out


# ----------------------------------------------------------------------------
# Parameter construction (deterministic, synthetic) + host-side packing.
# ----------------------------------------------------------------------------
def make_params(key, C, F, num_domains):
    ks = jax.random.split(key, 20)
    s = 0.1

    def lin(k, fi, fo):
        kw, kb = jax.random.split(k)
        return (s * jax.random.normal(kw, (fi, fo), jnp.float32),
                s * jax.random.normal(kb, (1, fo), jnp.float32))

    p = {}
    # stand-in encoder: 1x1 conv C -> F
    p["ew"], p["eb"] = lin(ks[0], C, F)
    # classifier: Linear(F, F//4) -> ReLU -> Dropout -> Linear(F//4, 1)
    p["cw1"], p["cb1"] = lin(ks[1], F, F // 4)
    p["cw2"], p["cb2"] = lin(ks[2], F // 4, 1)
    # ccdd_live discriminator block
    p["lw1"], p["lb1"] = lin(ks[3], F, F // 2)
    p["lw2"], p["lb2"] = lin(ks[4], F // 2, F // 2)
    p["lw3"], p["lb3"] = lin(ks[5], F // 2, num_domains)
    # ccdd_spoof discriminator block
    p["sw1"], p["sb1"] = lin(ks[6], F, F // 2)
    p["sw2"], p["sb2"] = lin(ks[7], F // 2, F // 2)
    p["sw3"], p["sb3"] = lin(ks[8], F // 2, num_domains)
    return p


def pack_params(p, C, F, num_domains):
    """Pack per-layer parameters into block matrices for the fused kernel."""
    F4, F2, D = F // 4, F // 2, num_domains
    # Packing invariants (see correctness notes): fused column budget.
    assert F <= FP and F4 + 2 * F2 <= FP and 2 * F2 + F4 <= FP and 1 + 2 * D <= FP

    # stand-in encoder: [C+1, FP] with the bias folded in as the last row
    # (matches the constant-1 column appended to x).
    wenc_aug = jnp.zeros((C + 1, FP), jnp.float32)
    wenc_aug = wenc_aug.at[:C, :F].set(p["ew"])
    wenc_aug = wenc_aug.at[C, :F].set(p["eb"][0])

    # layer 1: [cw1 | lw1 | sw1]  -> h1 cols [hc(0:F4) | hl | hs | 0]
    w1 = jnp.zeros((FP, FP), jnp.float32)
    w1 = w1.at[:F, 0:F4].set(p["cw1"])
    w1 = w1.at[:F, F4:F4 + F2].set(p["lw1"])
    w1 = w1.at[:F, F4 + F2:F4 + 2 * F2].set(p["sw1"])
    b1 = jnp.zeros((1, FP), jnp.float32)
    b1 = b1.at[0, 0:F4].set(p["cb1"][0])
    b1 = b1.at[0, F4:F4 + F2].set(p["lb1"][0])
    b1 = b1.at[0, F4 + F2:F4 + 2 * F2].set(p["sb1"][0])

    # layer 2: block-diag(lw2, sw2) + identity pass-through of the classifier
    # hidden (hc >= 0 after layer-1 ReLU, so the layer-2 ReLU is a no-op on it).
    # h2 cols: [hl2(0:F2) | hs2(F2:2F2) | hc(2F2:2F2+F4) | 0]
    w2 = jnp.zeros((FP, FP), jnp.float32)
    w2 = w2.at[F4:F4 + F2, 0:F2].set(p["lw2"])
    w2 = w2.at[F4 + F2:F4 + 2 * F2, F2:2 * F2].set(p["sw2"])
    w2 = w2.at[0:F4, 2 * F2:2 * F2 + F4].set(jnp.eye(F4, dtype=jnp.float32))
    b2 = jnp.zeros((1, FP), jnp.float32)
    b2 = b2.at[0, 0:F2].set(p["lb2"][0])
    b2 = b2.at[0, F2:2 * F2].set(p["sb2"][0])

    # layer 3: packed output cols [cl(0) | live(1:1+D) | spoof(1+D:1+2D) | 0]
    w3 = jnp.zeros((FP, FP), jnp.float32)
    w3 = w3.at[2 * F2:2 * F2 + F4, 0:1].set(p["cw2"])
    w3 = w3.at[0:F2, 1:1 + D].set(p["lw3"])
    w3 = w3.at[F2:2 * F2, 1 + D:1 + 2 * D].set(p["sw3"])
    b3 = jnp.zeros((1, FP), jnp.float32)
    b3 = b3.at[0, 0:1].set(p["cb2"][0])
    b3 = b3.at[0, 1:1 + D].set(p["lb3"][0])
    b3 = b3.at[0, 1 + D:1 + 2 * D].set(p["sb3"][0])

    w_slab = jnp.concatenate([w1, w2, w3], axis=0)                 # [3*FP, FP]
    b_slab = jnp.concatenate(
        [b1, b2, b3, jnp.zeros((5, FP), jnp.float32)], axis=0)     # [8, FP]
    return {"wenc_aug": wenc_aug, "w_slab": w_slab, "b_slab": b_slab}


def make_pool_rows(B, H, W):
    """Static row-form adaptive-avg-pool matrix: [BP, B*H*W], entries 1/HW.

    Row b selects (and averages) the HW positions of batch b; padded rows
    b >= B are all-zero so padded feats rows are exactly zero.
    """
    hw = H * W
    bhw = B * hw
    bp = max(8, ((B + 7) // 8) * 8)
    pos_batch = jnp.arange(bhw)[None, :] // hw            # [1, BHW]
    row_batch = jnp.arange(bp)[:, None]                   # [BP, 1]
    return jnp.where(pos_batch == row_batch, 1.0 / hw, 0.0).astype(jnp.float32)


# ----------------------------------------------------------------------------
# Pure-JAX reference for correctness checking.
# ----------------------------------------------------------------------------
def reference_forward(x_nchw, p):
    relu = lambda a: jnp.maximum(a, 0.0)
    B, C, H, W = x_nchw.shape
    xt = jnp.transpose(x_nchw, (0, 2, 3, 1)).reshape(B, H * W, C)
    h = relu(jnp.einsum("bhc,cf->bhf", xt, p["ew"], precision="highest") + p["eb"])
    feats = jnp.mean(h, axis=1)                                    # [B, F]

    def lin(a, w, b):
        return jnp.dot(a, w, precision="highest") + b

    cl = lin(relu(lin(feats, p["cw1"], p["cb1"])), p["cw2"], p["cb2"])

    def disc(w1, b1, w2, b2, w3, b3):
        d = relu(lin(feats, w1, b1))
        d = relu(lin(d, w2, b2))
        return lin(d, w3, b3)

    live = disc(p["lw1"], p["lb1"], p["lw2"], p["lb2"], p["lw3"], p["lb3"])
    spoof = disc(p["sw1"], p["sb1"], p["sw2"], p["sb2"], p["sw3"], p["sb3"])
    return cl, live, spoof


if __name__ == "__main__":
    B, C, H, W = 2, 4, 16, 16
    F = 32            # bottleneck_features of the stand-in encoder
    NUM_DOMAINS = 3

    key = jax.random.PRNGKey(0)
    kx, kp = jax.random.split(key)
    x = jax.random.normal(kx, (B, C, H, W), jnp.float32)
    params = make_params(kp, C, F, NUM_DOMAINS)
    packed = pack_params(params, C, F, NUM_DOMAINS)
    pool_rows = make_pool_rows(B, H, W)

    cl_out, live_out, spoof_out = dafl_fas_forward(x, packed, pool_rows,
                                                   NUM_DOMAINS)
    jax.block_until_ready((cl_out, live_out, spoof_out))

    assert cl_out.shape == (B, 1)
    assert live_out.shape == (B, NUM_DOMAINS)
    assert spoof_out.shape == (B, NUM_DOMAINS)

    ref_cl, ref_live, ref_spoof = reference_forward(x, params)
    assert jnp.allclose(cl_out, ref_cl, atol=1e-3, rtol=1e-3)
    assert jnp.allclose(live_out, ref_live, atol=1e-3, rtol=1e-3)
    assert jnp.allclose(spoof_out, ref_spoof, atol=1e-3, rtol=1e-3)

    print("KERNEL_OK")
</pallas_src>

<mosaic_0001>
module attributes {stable_mosaic.version = 11 : i64} {
  func.func @dafl_fused_kernel(%arg0: i32, %arg1: memref<256x5xf32, #tpu.memory_space<vmem>>, %arg2: memref<8x256xf32, #tpu.memory_space<vmem>>, %arg3: memref<5x128xf32, #tpu.memory_space<vmem>>, %arg4: memref<384x128xf32, #tpu.memory_space<vmem>>, %arg5: memref<8x128xf32, #tpu.memory_space<vmem>>, %arg6: memref<8x128xf32, #tpu.memory_space<vmem>>, %arg7: memref<8x128xf32, #tpu.memory_space<vmem>>) attributes {dimension_semantics = [#tpu.dimension_semantics<arbitrary>], iteration_bounds = array<i64: 2>, scalar_prefetch = 0 : i64, scratch_operands = 1 : i64, tpu.core_type = #tpu.core_type<tc>, window_params = [{transform_indices = @transform_0, window_bounds = array<i64: 256, 5>}, {transform_indices = @transform_1, window_bounds = array<i64: 8, 256>}, {pipeline_mode = #tpu.pipeline_mode<synchronous>, transform_indices = @transform_2, window_bounds = array<i64: 5, 128>}, {pipeline_mode = #tpu.pipeline_mode<synchronous>, transform_indices = @transform_3, window_bounds = array<i64: 384, 128>}, {pipeline_mode = #tpu.pipeline_mode<synchronous>, transform_indices = @transform_4, window_bounds = array<i64: 8, 128>}, {pipeline_mode = #tpu.pipeline_mode<synchronous>, transform_indices = @transform_5, window_bounds = array<i64: 8, 128>}]} {
    %c0_i32 = arith.constant 0 : i32
    %0 = arith.cmpi eq, %arg0, %c0_i32 : i32
    %1 = arith.extui %0 : i1 to i32
    %c0_i32_0 = arith.constant 0 : i32
    %2 = arith.cmpi ne, %1, %c0_i32_0 : i32
    scf.if %2 {
      %cst_13 = arith.constant 0.000000e+00 : f32
      %16 = vector.broadcast %cst_13 : f32 to vector<8x128xf32>
      %c0_14 = arith.constant 0 : index
      %c0_15 = arith.constant 0 : index
      %17 = vector.load %arg7[%c0_14, %c0_15] : memref<8x128xf32, #tpu.memory_space<vmem>>, vector<8x128xf32>
      tpu.vector_store %arg7[%c0_14, %c0_15], %16 {strides = array<i32>} : memref<8x128xf32, #tpu.memory_space<vmem>>, vector<8x128xf32>,
    } else {
    }
    %c0 = arith.constant 0 : index
    %c0_1 = arith.constant 0 : index
    %3 = vector.load %arg1[%c0, %c0_1] : memref<256x5xf32, #tpu.memory_space<vmem>>, vector<256x5xf32>
    %c0_2 = arith.constant 0 : index
    %c0_3 = arith.constant 0 : index
    %4 = vector.load %arg3[%c0_2, %c0_3] : memref<5x128xf32, #tpu.memory_space<vmem>>, vector<5x128xf32>
    %cst = arith.constant dense<0.000000e+00> : vector<256x128xf32>
    %5 = tpu.matmul %3, %4, %cst {dimension_numbers = #tpu.dot_dimension_numbers<[1], [0], [0], [1], [0, 0, 1, 1], [], []>} : vector<256x5xf32>, vector<5x128xf32>, vector<256x128xf32> -> vector<256x128xf32>
    %cst_4 = arith.constant 0.000000e+00 : f32
    %6 = vector.broadcast %cst_4 : f32 to vector<256x128xf32>
    %7 = arith.maximumf %5, %6 : vector<256x128xf32>
    %c0_5 = arith.constant 0 : index
    %c0_6 = arith.constant 0 : index
    %8 = vector.load %arg7[%c0_5, %c0_6] : memref<8x128xf32, #tpu.memory_space<vmem>>, vector<8x128xf32>
    %c0_7 = arith.constant 0 : index
    %c0_8 = arith.constant 0 : index
    %9 = vector.load %arg2[%c0_7, %c0_8] : memref<8x256xf32, #tpu.memory_space<vmem>>, vector<8x256xf32>
    %cst_9 = arith.constant dense<0.000000e+00> : vector<8x128xf32>
    %10 = tpu.matmul %9, %7, %cst_9 {dimension_numbers = #tpu.dot_dimension_numbers<[1], [0], [0], [1], [0, 0, 1, 1], [], []>} : vector<8x256xf32>, vector<256x128xf32>, vector<8x128xf32> -> vector<8x128xf32>
    %11 = arith.addf %8, %10 : vector<8x128xf32>
    %c0_10 = arith.constant 0 : index
    %c0_11 = arith.constant 0 : index
    %12 = vector.load %arg7[%c0_10, %c0_11] : memref<8x128xf32, #tpu.memory_space<vmem>>, vector<8x128xf32>
    tpu.vector_store %arg7[%c0_10, %c0_11], %11 {strides = array<i32>} : memref<8x128xf32, #tpu.memory_space<vmem>>, vector<8x128xf32>,
    %c1_i32 = arith.constant 1 : i32
    %13 = arith.cmpi eq, %arg0, %c1_i32 : i32
    %14 = arith.extui %13 : i1 to i32
    %c0_i32_12 = arith.constant 0 : i32
    %15 = arith.cmpi ne, %14, %c0_i32_12 : i32
    scf.if %15 {
      %c0_13 = arith.constant 0 : index
      %c0_14 = arith.constant 0 : index
      %16 = vector.load %arg7[%c0_13, %c0_14] : memref<8x128xf32, #tpu.memory_space<vmem>>, vector<8x128xf32>
      %c0_15 = arith.constant 0 : index
      %c0_16 = arith.constant 0 : index
      %17 = vector.load %arg4[%c0_15, %c0_16] : memref<384x128xf32, #tpu.memory_space<vmem>>, vector<128x128xf32>
      %c128 = arith.constant 128 : index
      %c0_17 = arith.constant 0 : index
      %18 = vector.load %arg4[%c128, %c0_17] : memref<384x128xf32, #tpu.memory_space<vmem>>, vector<128x128xf32>
      %c256 = arith.constant 256 : index
      %c0_18 = arith.constant 0 : index
      %19 = vector.load %arg4[%c256, %c0_18] : memref<384x128xf32, #tpu.memory_space<vmem>>, vector<128x128xf32>
      %c0_19 = arith.constant 0 : index
      %c0_20 = arith.constant 0 : index
      %20 = vector.load %arg5[%c0_19, %c0_20] : memref<8x128xf32, #tpu.memory_space<vmem>>, vector<1x128xf32>
      %c1 = arith.constant 1 : index
      %c0_21 = arith.constant 0 : index
      %21 = vector.load %arg5[%c1, %c0_21] : memref<8x128xf32, #tpu.memory_space<vmem>>, vector<1x128xf32>
      %c2 = arith.constant 2 : index
      %c0_22 = arith.constant 0 : index
      %22 = vector.load %arg5[%c2, %c0_22] : memref<8x128xf32, #tpu.memory_space<vmem>>, vector<1x128xf32>
      %cst_23 = arith.constant dense<0.000000e+00> : vector<8x128xf32>
      %23 = tpu.matmul %16, %17, %cst_23 {dimension_numbers = #tpu.dot_dimension_numbers<[1], [0], [0], [1], [0, 0, 1, 1], [], []>} : vector<8x128xf32>, vector<128x128xf32>, vector<8x128xf32> -> vector<8x128xf32>
      %24 = vector.broadcast %20 : vector<1x128xf32> to vector<8x128xf32>
      %25 = arith.addf %23, %24 : vector<8x128xf32>
      %cst_24 = arith.constant 0.000000e+00 : f32
      %26 = vector.broadcast %cst_24 : f32 to vector<8x128xf32>
      %27 = arith.maximumf %25, %26 : vector<8x128xf32>
      %cst_25 = arith.constant dense<0.000000e+00> : vector<8x128xf32>
      %28 = tpu.matmul %27, %18, %cst_25 {dimension_numbers = #tpu.dot_dimension_numbers<[1], [0], [0], [1], [0, 0, 1, 1], [], []>} : vector<8x128xf32>, vector<128x128xf32>, vector<8x128xf32> -> vector<8x128xf32>
      %29 = vector.broadcast %21 : vector<1x128xf32> to vector<8x128xf32>
      %30 = arith.addf %28, %29 : vector<8x128xf32>
      %cst_26 = arith.constant 0.000000e+00 : f32
      %31 = vector.broadcast %cst_26 : f32 to vector<8x128xf32>
      %32 = arith.maximumf %30, %31 : vector<8x128xf32>
      %cst_27 = arith.constant dense<0.000000e+00> : vector<8x128xf32>
      %33 = tpu.matmul %32, %19, %cst_27 {dimension_numbers = #tpu.dot_dimension_numbers<[1], [0], [0], [1], [0, 0, 1, 1], [], []>} : vector<8x128xf32>, vector<128x128xf32>, vector<8x128xf32> -> vector<8x128xf32>
      %34 = vector.broadcast %22 : vector<1x128xf32> to vector<8x128xf32>
      %35 = arith.addf %33, %34 : vector<8x128xf32>
      %c0_28 = arith.constant 0 : index
      %c0_29 = arith.constant 0 : index
      %36 = vector.load %arg6[%c0_28, %c0_29] : memref<8x128xf32, #tpu.memory_space<vmem>>, vector<8x128xf32>
      tpu.vector_store %arg6[%c0_28, %c0_29], %35 {strides = array<i32>} : memref<8x128xf32, #tpu.memory_space<vmem>>, vector<8x128xf32>,
    } else {
    }
    return
  }
  func.func @transform_0(%arg0: i32) -> (i32, i32) {
    %c0_i32 = arith.constant 0 : i32
    %c0_i32_0 = arith.constant 0 : i32
    return %arg0, %c0_i32 : i32, i32
  }
  func.func @transform_1(%arg0: i32) -> (i32, i32) {
    %c0_i32 = arith.constant 0 : i32
    %c0_i32_0 = arith.constant 0 : i32
    return %c0_i32, %arg0 : i32, i32
  }
  func.func @transform_2(%arg0: i32) -> (i32, i32) {
    %c0_i32 = arith.constant 0 : i32
    %c0_i32_0 = arith.constant 0 : i32
    %c0_i32_1 = arith.constant 0 : i32
    return %c0_i32, %c0_i32_0 : i32, i32
  }
  func.func @transform_3(%arg0: i32) -> (i32, i32) {
    %c0_i32 = arith.constant 0 : i32
    %c0_i32_0 = arith.constant 0 : i32
    %c0_i32_1 = arith.constant 0 : i32
    return %c0_i32, %c0_i32_0 : i32, i32
  }
  func.func @transform_4(%arg0: i32) -> (i32, i32) {
    %c0_i32 = arith.constant 0 : i32
    %c0_i32_0 = arith.constant 0 : i32
    %c0_i32_1 = arith.constant 0 : i32
    return %c0_i32, %c0_i32_0 : i32, i32
  }
  func.func @transform_5(%arg0: i32) -> (i32, i32) {
    %c0_i32 = arith.constant 0 : i32
    %c0_i32_0 = arith.constant 0 : i32
    %c0_i32_1 = arith.constant 0 : i32
    return %c0_i32, %c0_i32_0 : i32, i32
  }
}

</mosaic_0001>

<bundles_post_ra>
// kernel: dafl_fas_forward.1
= control target key start
LH: loop header
LB: loop body
LE: loop exit
PB: predicated region body
PF: predicated region fallthrough
CT: control target
= control target key end

     0   :  { %s1506_s18 = smov 0   ;;  %s1788_s0 = inlined_call_operand.vmem [shape: f32[512,5], index: 0, kind: input, shape index: {}]   ;;  %s1789_s1 = inlined_call_operand.vmem [shape: f32[8,512], index: 1, kind: input, shape index: {}]   ;;  %s1790_s2 = inlined_call_operand.vmem [shape: f32[5,128], index: 2, kind: input, shape index: {}]   ;;  %s1791_s3 = inlined_call_operand.vmem [shape: f32[384,128], index: 3, kind: input, shape index: {}]   ;;  %s1792_s4 = inlined_call_operand.vmem [shape: f32[8,128], index: 4, kind: input, shape index: {}]   ;;  %s1793_s5 = inlined_call_operand.vmem [shape: f32[8,128], index: 5, kind: output, shape index: {}]  }
   0x1 LB: > { %s1512_s19 = sadd.s32 4294967295, %s1470_s18   ;;  %p1029_p0 = scmp.ge.s32.totalorder %s1470_s18, 1  ;;  %s1470_s18 = sphi %s1506_s18, %s15_s18  }
   0x2   : > { %p194_p1 = scmp.lt.s32.totalorder %s1470_s18, 3 }
   0x4   : > { %p195_p2 = pnand %p1029_p0, %p194_p1 }
   0x5   : > { %s1030_s20 = sshll.u32 (!%p195_p2), %s1512_s19, 5  ;;  %s1032_s21 = sshll.u32 (!%p195_p2), %s1512_s19, 1 }
   0x6   : > { %198 = sbr.rel (%p195_p2) target bundleno = 1179 (0x49b), region = 40  ;;  %p223_p3 = scmp.lt.s32.totalorder (!%p195_p2), %s1030_s20, 63 }
   0x7   : > { %p229_p4 = scmp.lt.s32.totalorder (!%p195_p2), %s1032_s21, 3  ;;  %p1034_p5 = scmp.ne.s32.totalorder (!%p195_p2), %s1512_s19, 0 }
   0xd   : > { %s1795_s20 = smov (!%p223_p3, %s1030_s20), 63  ;;  %s1797_s21 = smov (!%p229_p4, %s1032_s21), 3 }
   0xe   : > { %s1031_s22 = sshll.u32 %s1795_s20, 3  ;;  %s1033_s26 = sshll.u32 %s1797_s21, 3  ;;  %v1472_v0 = vmov (!%p1034_p5), 0.0  }
   0xf   : > { %s1521_s25 = scalar_lea.vmem %s1788_s0, %s1031_s22  ;;  %s1526_s29 = scalar_lea.vmem %s1789_s1, %s1033_s26  ;;  %238 = vst [vmem:[#allocation2] sm:$0xff] (!%p1034_p5), %v1472_v0 }
  0x10   : > { %237 = sbr.rel (%p1034_p5) target bundleno = 23 (0x17), region = 44 }
  0x17 PF: > { %v271_v1 = vld [vmem:[%s1790_s2] sm:$0x1f]  ;;  %vm369_vm0 = vcmask 1044480   ;;  %vm272_vm1 = vcmask 39936   ;;  %v240_v3 = vld [vmem:[%s1521_s25 + $0x8] sm:$0xff]  ;;  %v241_v4 = vld [vmem:[%s1521_s25 + $0x10] sm:$0xff] }
  0x18   : > { %v239_v2 = vld [vmem:[%s1521_s25] sm:$0xff]  ;;  %1193 = vmatprep.subr.msk.mxu0 %vm369_vm0, %v271_v1  ;;  %v242_v5 = vld [vmem:[%s1521_s25 + $0x18] sm:$0xff]  ;;  %v244_v7 = vld [vmem:[%s1521_s25 + $0x28] sm:$0xff]  ;;  %p1068_p6 = scmp.ne.s32.totalorder %s1512_s19, 1 }
  0x19   : > { %1195 = vmatprep.mubr.msk.f32.mxu0 %vm272_vm1, %v239_v2  ;;  %1194 = vmatpush3.msk.msra.mxu0 %vm369_vm0, %v271_v1  ;;  %v243_v6 = vld [vmem:[%s1521_s25 + $0x20] sm:$0xff]  ;;  %v245_v8 = vld [vmem:[%s1521_s25 + $0x30] sm:$0xff]  ;;  %v246_v9 = vld [vmem:[%s1521_s25 + $0x38] sm:$0xff]  ;;  %vm1474_vm2 = vmmov (!%p1068_p6), 0  }
  0x1a   : > { %1196 = vmatmul.mubr.msk.f32.vlgmr.msra.gmra.mrb[0].mxu0 %vm272_vm1, %v240_v3  ;;  %v247_v10 = vld [vmem:[%s1521_s25 + $0x40] sm:$0xff]  ;;  %v248_v11 = vld [vmem:[%s1521_s25 + $0x48] sm:$0xff]  ;;  %v249_v12 = vld [vmem:[%s1521_s25 + $0x50] sm:$0xff] }
  0x1b   : > { %1198 = vmatprep.mubr.msk.f32.mxu0 %vm272_vm1, %v241_v4  ;;  %v250_v13 = vld [vmem:[%s1521_s25 + $0x58] sm:$0xff]  ;;  %v251_v14 = vld [vmem:[%s1521_s25 + $0x60] sm:$0xff]  ;;  %v252_v15 = vld [vmem:[%s1521_s25 + $0x68] sm:$0xff] }
  0x1c   : > { %v253_v16 = vld [vmem:[%s1521_s25 + $0x70] sm:$0xff]  ;;  %v254_v17 = vld [vmem:[%s1521_s25 + $0x78] sm:$0xff]  ;;  %v255_v18 = vld [vmem:[%s1521_s25 + $0x80] sm:$0xff] }
  0x1d   : > { %v256_v19 = vld [vmem:[%s1521_s25 + $0x88] sm:$0xff]  ;;  %v257_v20 = vld [vmem:[%s1521_s25 + $0x90] sm:$0xff]  ;;  %v258_v21 = vld [vmem:[%s1521_s25 + $0x98] sm:$0xff] }
  0x1e   : > { %1199 = vmatmul.mubr.msk.f32.gmra.mrb[2].mxu0 %vm272_vm1, %v242_v5  ;;  %v259_v22 = vld [vmem:[%s1521_s25 + $0xa0] sm:$0xff]  ;;  %v260_v23 = vld [vmem:[%s1521_s25 + $0xa8] sm:$0xff]  ;;  %v261_v24 = vld [vmem:[%s1521_s25 + $0xb0] sm:$0xff] }
  0x1f   : > { %1201 = vmatprep.mubr.msk.f32.mxu0 %vm272_vm1, %v243_v6  ;;  %v262_v25 = vld [vmem:[%s1521_s25 + $0xb8] sm:$0xff]  ;;  %v263_v26 = vld [vmem:[%s1521_s25 + $0xc0] sm:$0xff]  ;;  %v264_v27 = vld [vmem:[%s1521_s25 + $0xc8] sm:$0xff] }
  0x20   : > { %v265_v28 = vld [vmem:[%s1521_s25 + $0xd0] sm:$0xff]  ;;  %v266_v29 = vld [vmem:[%s1521_s25 + $0xd8] sm:$0xff]  ;;  %v267_v30 = vld [vmem:[%s1521_s25 + $0xe0] sm:$0xff] }
  0x21   : > { %v268_v31 = vld [vmem:[%s1521_s25 + $0xe8] sm:$0xff]  ;;  %v269_v32 = vld [vmem:[%s1521_s25 + $0xf0] sm:$0xff]  ;;  %v270_v33 = vld [vmem:[%s1521_s25 + $0xf8] sm:$0xff] }
  0x22   : > { %1202 = vmatmul.mubr.msk.f32.gmra.mrb[4].mxu0 %vm272_vm1, %v244_v7  ;;  %v632_v34 = vld [vmem:[%s1526_s29 + $0x8] sm:$0xff] }
  0x23   : > { %1204 = vmatprep.mubr.msk.f32.mxu0 %vm272_vm1, %v245_v8  ;;  %697 = vmatprep.mubr.f32.mxu1 %v632_v34 }
  0x26   : > { %1205 = vmatmul.mubr.msk.f32.gmra.mrb[6].mxu0 %vm272_vm1, %v246_v9 }
  0x27   : > { %1207 = vmatprep.mubr.msk.f32.mxu0 %vm272_vm1, %v247_v10 }
  0x2a   : > { %1208 = vmatmul.mubr.msk.f32.gmra.mrb[8].mxu0 %vm272_vm1, %v248_v11 }
  0x2b   : > { %1210 = vmatprep.mubr.msk.f32.mxu0 %vm272_vm1, %v249_v12 }
  0x2e   : > { %1211 = vmatmul.mubr.msk.f32.gmra.mrb[10].mxu0 %vm272_vm1, %v250_v13 }
  0x2f   : > { %1213 = vmatprep.mubr.msk.f32.mxu0 %vm272_vm1, %v251_v14 }
  0x32   : > { %1214 = vmatmul.mubr.msk.f32.gmra.mrb[12].mxu0 %vm272_vm1, %v252_v15 }
  0x33   : > { %1216 = vmatprep.mubr.msk.f32.mxu0 %vm272_vm1, %v253_v16 }
  0x36   : > { %1217 = vmatmul.mubr.msk.f32.gmra.mrb[14].mxu0 %vm272_vm1, %v254_v17 }
  0x37   : > { %1219 = vmatprep.mubr.msk.f32.mxu0 %vm272_vm1, %v255_v18 }
  0x3a   : > { %1220 = vmatmul.mubr.msk.f32.gmra.mrb[16].mxu0 %vm272_vm1, %v256_v19 }
  0x3b   : > { %1222 = vmatprep.mubr.msk.f32.mxu0 %vm272_vm1, %v257_v20 }
  0x3e   : > { %1223 = vmatmul.mubr.msk.f32.gmra.mrb[18].mxu0 %vm272_vm1, %v258_v21 }
  0x3f   : > { %1225 = vmatprep.mubr.msk.f32.mxu0 %vm272_vm1, %v259_v22 }
  0x42   : > { %1226 = vmatmul.mubr.msk.f32.gmra.mrb[20].mxu0 %vm272_vm1, %v260_v23 }
  0x43   : > { %1228 = vmatprep.mubr.msk.f32.mxu0 %vm272_vm1, %v261_v24 }
  0x46   : > { %1229 = vmatmul.mubr.msk.f32.gmra.mrb[22].mxu0 %vm272_vm1, %v262_v25 }
  0x47   : > { %1231 = vmatprep.mubr.msk.f32.mxu0 %vm272_vm1, %v263_v26 }
  0x4a   : > { %1232 = vmatmul.mubr.msk.f32.gmra.mrb[24].mxu0 %vm272_vm1, %v264_v27 }
  0x4b   : > { %1234 = vmatprep.mubr.msk.f32.mxu0 %vm272_vm1, %v265_v28 }
  0x4e   : > { %1235 = vmatmul.mubr.msk.f32.gmra.mrb[26].mxu0 %vm272_vm1, %v266_v29 }
  0x4f   : > { %1237 = vmatprep.mubr.msk.f32.mxu0 %vm272_vm1, %v267_v30 }
  0x52   : > { %1238 = vmatmul.mubr.msk.f32.gmra.mrb[28].mxu0 %vm272_vm1, %v268_v31 }
  0x53   : > { %1240 = vmatprep.mubr.msk.f32.mxu0 %vm272_vm1, %v269_v32 }
  0x56   : > { %1241 = vmatmul.mubr.msk.f32.gmra.mrb[30].mxu0 %vm272_vm1, %v270_v33 }
  0xed   : > { %v1197_v35 = vpop.f32.mrb[0].mxu0 }
  0xee   : > { %v599_v36 = vmax.f32 %v1197_v35, 0.0  ;;  %v439_v37 = vpop.f32.mrb[1].mxu0 }
  0xef   : > { %v598_v38 = vmax.f32 %v439_v37, 0.0 }
  0xf1   : > { %v1200_v39 = vpop.f32.mrb[2].mxu0  ;;  %v1350_v40 = vpack.c.bf16 %v599_v36, %v598_v38 }
  0xf2   : > { %v601_v41 = vmax.f32 %v1200_v39, 0.0  ;;  %v449_v42 = vpop.f32.mrb[3].mxu0 }
  0xf3   : > { %v600_v43 = vmax.f32 %v449_v42, 0.0 }
  0xf5   : > { %v1354_v44 = vpack.c.bf16 %v601_v41, %v600_v43  ;;  %v1203_v45 = vpop.f32.mrb[4].mxu0 }
  0xf6   : > { %v603_v46 = vmax.f32 %v1203_v45, 0.0  ;;  %v459_v47 = vpop.f32.mrb[5].mxu0 }
  0xf7   : > { %v602_v48 = vmax.f32 %v459_v47, 0.0 }
  0xf9   : > { %v1358_v49 = vpack.c.bf16 %v603_v46, %v602_v48  ;;  %v1206_v50 = vpop.f32.mrb[6].mxu0 }
  0xfa   : > { %v605_v51 = vmax.f32 %v1206_v50, 0.0  ;;  %v469_v52 = vpop.f32.mrb[7].mxu0 }
  0xfb   : > { %v604_v53 = vmax.f32 %v469_v52, 0.0 }
  0xfd   : > { %v1362_v54 = vpack.c.bf16 %v605_v51, %v604_v53  ;;  %v1209_v55 = vpop.f32.mrb[8].mxu0  ;;  %v631_v51 = vld [vmem:[%s1526_s29] sm:$0xff] }
  0xfe   : > { %v607_v56 = vmax.f32 %v1209_v55, 0.0  ;;  %v479_v57 = vpop.f32.mrb[9].mxu0  ;;  %v630_v53 = vld [vmem:[#allocation2] sm:$0xff] }
  0xff   : > { %v606_v58 = vmax.f32 %v479_v57, 0.0  ;;  %v710_v57 = vld [vmem:[%s1791_s3] sm:$0xff] (!%p1068_p6) }
 0x101   : > { %v1366_v59 = vpack.c.bf16 %v607_v56, %v606_v58  ;;  %v1212_v60 = vpop.f32.mrb[10].mxu0  ;;  %v711_v58 = vld [vmem:[%s1791_s3 + $0x8] sm:$0xff] (!%p1068_p6) }
 0x102   : > { %v609_v61 = vmax.f32 %v1212_v60, 0.0  ;;  %v489_v62 = vpop.f32.mrb[11].mxu0  ;;  %v1473_v60 = vmov (!%p1068_p6), 0.0|0.0  }
 0x103   : > { %v608_v63 = vmax.f32 %v489_v62, 0.0  ;;  %1380 = vmatprep.subr.bf16.mxu0 (!%p1068_p6), %v1473_v60  ;;  %v713_v62 = vld [vmem:[%s1791_s3 + $0x18] sm:$0xff] (!%p1068_p6) }
 0x105   : > { %v1370_v0 = vpack.c.bf16 %v609_v61, %v608_v63  ;;  %v1215_v1 = vpop.f32.mrb[12].mxu0  ;;  %v1381_v61 = vpack.c.bf16 (!%p1068_p6), %v711_v58, %v710_v57  ;;  %v1475_v63 = vmov (!%p1068_p6), 0.0   ;;  %v751_v57 = vld [vmem:[%s1791_s3 + $0x148] sm:$0xff] (!%p1068_p6) }
 0x106   : > { %v611_v2 = vmax.f32 %v1215_v1, 0.0  ;;  %v499_v3 = vpop.f32.mrb[13].mxu0  ;;  %1275 = vmatprep.mubr.msk.f32.mxu0 (!%p1068_p6), %vm1474_vm2, %v1475_v63  ;;  %v714_v1 = vld [vmem:[%s1791_s3 + $0x20] sm:$0xff] (!%p1068_p6) }
 0x107   : > { %v610_v4 = vmax.f32 %v499_v3, 0.0  ;;  %1382 = vmatpush3.bf16.msra.mxu0 (!%p1068_p6), %v1381_v61  ;;  %v726_v3 = vld [vmem:[%s1791_s3 + $0x80] sm:$0xff] (!%p1068_p6)  ;;  %v753_v61 = vld [vmem:[%s1791_s3 + $0x158] sm:$0xff] (!%p1068_p6) }
 0x108   : > { %1383 = vmatprep.subr.bf16.mxu0 (!%p1068_p6), %v1473_v60 }
 0x109   : > { %v1374_v5 = vpack.c.bf16 %v611_v2, %v610_v4  ;;  %v1218_v6 = vpop.f32.mrb[14].mxu0  ;;  %v715_v2 = vld [vmem:[%s1791_s3 + $0x28] sm:$0xff] (!%p1068_p6) }
 0x10a   : > { %v613_v7 = vmax.f32 %v1218_v6, 0.0  ;;  %v509_v8 = vpop.f32.mrb[15].mxu0  ;;  %v727_v4 = vld [vmem:[%s1791_s3 + $0x88] sm:$0xff] (!%p1068_p6)  ;;  %v729_v6 = vld [vmem:[%s1791_s3 + $0x98] sm:$0xff] (!%p1068_p6) }
 0x10b   : > { %v612_v9 = vmax.f32 %v509_v8, 0.0  ;;  %v1405_v8 = vpack.c.bf16 (!%p1068_p6), %v727_v4, %v726_v3 }
 0x10d   : > { %v1378_v10 = vpack.c.bf16 %v613_v7, %v612_v9  ;;  %v1221_v11 = vpop.f32.mrb[16].mxu0  ;;  %v1387_v7 = vpack.c.bf16 (!%p1068_p6), %v715_v2, %v714_v1  ;;  %v716_v9 = vld [vmem:[%s1791_s3 + $0x30] sm:$0xff] (!%p1068_p6)  ;;  %v1069_v2 = vld [vmem:[%s1792_s4] ss:$0 sm:$0xff] (!%p1068_p6) }
 0x10e   : > { %v615_v12 = vmax.f32 %v1221_v11, 0.0  ;;  %v519_v13 = vpop.f32.mrb[17].mxu0 }
 0x10f   : > { %v614_v14 = vmax.f32 %v519_v13, 0.0  ;;  %v731_v13 = vld [vmem:[%s1791_s3 + $0xa8] sm:$0xff] (!%p1068_p6) }
 0x111   : > { %v1224_v15 = vpop.f32.mrb[18].mxu0  ;;  %v1348_v16 = vpack.c.bf16 %v615_v12, %v614_v14  ;;  %v730_v12 = vld [vmem:[%s1791_s3 + $0xa0] sm:$0xff] (!%p1068_p6) }
 0x112   : > { %v617_v17 = vmax.f32 %v1224_v15, 0.0  ;;  %v529_v18 = vpop.f32.mrb[19].mxu0  ;;  %v718_v15 = vld [vmem:[%s1791_s3 + $0x40] sm:$0xff] (!%p1068_p6) }
 0x113   : > { %v616_v19 = vmax.f32 %v529_v18, 0.0  ;;  %1349 = vmatprep.subr.bf16.mxu1 %v1348_v16  ;;  %v719_v16 = vld [vmem:[%s1791_s3 + $0x48] sm:$0xff] (!%p1068_p6)  ;;  %v732_v18 = vld [vmem:[%s1791_s3 + $0xb0] sm:$0xff] (!%p1068_p6) }
 0x114   : > { %1351 = vmatpush3.bf16.msra.mxu1 %v1350_v40 }
 0x115   : > { %v1352_v20 = vpack.c.bf16 %v617_v17, %v616_v19  ;;  %v1227_v21 = vpop.f32.mrb[20].mxu0  ;;  %v1411_v17 = vpack.c.bf16 (!%p1068_p6), %v731_v13, %v730_v12  ;;  %v733_v19 = vld [vmem:[%s1791_s3 + $0xb8] sm:$0xff] (!%p1068_p6) }
 0x116   : > { %v619_v22 = vmax.f32 %v1227_v21, 0.0  ;;  %v539_v23 = vpop.f32.mrb[21].mxu0  ;;  %v720_v21 = vld [vmem:[%s1791_s3 + $0x50] sm:$0xff] (!%p1068_p6) }
 0x117   : > { %v618_v24 = vmax.f32 %v539_v23, 0.0  ;;  %1353 = vmatprep.subr.bf16.mxu1 %v1352_v20  ;;  %v1393_v20 = vpack.c.bf16 (!%p1068_p6), %v719_v16, %v718_v15  ;;  %v1414_v23 = vpack.c.bf16 (!%p1068_p6), %v733_v19, %v732_v18 }
 0x118   : > { %1355 = vmatpush3.bf16.msra.mxu1 %v1354_v44 }
 0x119   : > { %v1356_v25 = vpack.c.bf16 %v619_v22, %v618_v24  ;;  %v1230_v26 = vpop.f32.mrb[22].mxu0  ;;  %v721_v22 = vld [vmem:[%s1791_s3 + $0x58] sm:$0xff] (!%p1068_p6)  ;;  %v734_v24 = vld [vmem:[%s1791_s3 + $0xc0] sm:$0xff] (!%p1068_p6) }
 0x11a   : > { %v621_v27 = vmax.f32 %v1230_v26, 0.0  ;;  %v549_v28 = vpop.f32.mrb[23].mxu0  ;;  %v1396_v26 = vpack.c.bf16 (!%p1068_p6), %v721_v22, %v720_v21 }
 0x11b   : > { %v620_v29 = vmax.f32 %v549_v28, 0.0  ;;  %1357 = vmatprep.subr.bf16.mxu1 %v1356_v25  ;;  %v735_v25 = vld [vmem:[%s1791_s3 + $0xc8] sm:$0xff] (!%p1068_p6) }
 0x11c   : > { %1359 = vmatpush3.bf16.msra.mxu1 %v1358_v49  ;;  %v723_v28 = vld [vmem:[%s1791_s3 + $0x68] sm:$0xff] (!%p1068_p6) }
 0x11d   : > { %v1360_v30 = vpack.c.bf16 %v621_v27, %v620_v29  ;;  %v1233_v31 = vpop.f32.mrb[24].mxu0  ;;  %v722_v27 = vld [vmem:[%s1791_s3 + $0x60] sm:$0xff] (!%p1068_p6)  ;;  %v1417_v29 = vpack.c.bf16 (!%p1068_p6), %v735_v25, %v734_v24 }
 0x11e   : > { %v623_v32 = vmax.f32 %v1233_v31, 0.0  ;;  %v559_v33 = vpop.f32.mrb[25].mxu0  ;;  %v737_v31 = vld [vmem:[%s1791_s3 + $0xd8] sm:$0xff] (!%p1068_p6) }
 0x11f   : > { %v622_v34 = vmax.f32 %v559_v33, 0.0  ;;  %1361 = vmatprep.subr.bf16.mxu1 %v1360_v30  ;;  %v736_v30 = vld [vmem:[%s1791_s3 + $0xd0] sm:$0xff] (!%p1068_p6) }
 0x120   : > { %1363 = vmatpush3.bf16.msra.mxu1 %v1362_v54  ;;  %v724_v33 = vld [vmem:[%s1791_s3 + $0x70] sm:$0xff] (!%p1068_p6) }
 0x121   : > { %v1364_v35 = vpack.c.bf16 %v623_v32, %v622_v34  ;;  %v1236_v36 = vpop.f32.mrb[26].mxu0  ;;  %v1399_v32 = vpack.c.bf16 (!%p1068_p6), %v723_v28, %v722_v27  ;;  %v725_v34 = vld [vmem:[%s1791_s3 + $0x78] sm:$0xff] (!%p1068_p6) }
 0x122   : > { %v625_v37 = vmax.f32 %v1236_v36, 0.0  ;;  %v569_v38 = vpop.f32.mrb[27].mxu0  ;;  %v738_v36 = vld [vmem:[%s1791_s3 + $0xe0] sm:$0xff] (!%p1068_p6) }
 0x123   : > { %v624_v39 = vmax.f32 %v569_v38, 0.0  ;;  %1365 = vmatprep.subr.bf16.mxu1 %v1364_v35  ;;  %v1420_v35 = vpack.c.bf16 (!%p1068_p6), %v737_v31, %v736_v30  ;;  %v1402_v38 = vpack.c.bf16 (!%p1068_p6), %v725_v34, %v724_v33 }
 0x124   : > { %1367 = vmatpush3.bf16.msra.mxu1 %v1366_v59  ;;  %v712_v59 = vld [vmem:[%s1791_s3 + $0x10] sm:$0xff] (!%p1068_p6) }
 0x125   : > { %v1368_v40 = vpack.c.bf16 %v625_v37, %v624_v39  ;;  %v1239_v41 = vpop.f32.mrb[28].mxu0  ;;  %v739_v37 = vld [vmem:[%s1791_s3 + $0xe8] sm:$0xff] (!%p1068_p6) }
 0x126   : > { %v627_v42 = vmax.f32 %v1239_v41, 0.0  ;;  %v579_v43 = vpop.f32.mrb[29].mxu0  ;;  %v1423_v39 = vpack.c.bf16 (!%p1068_p6), %v739_v37, %v738_v36  ;;  %v740_v41 = vld [vmem:[%s1791_s3 + $0xf0] sm:$0xff] (!%p1068_p6) }
 0x127   : > { %v626_v44 = vmax.f32 %v579_v43, 0.0  ;;  %1369 = vmatprep.subr.bf16.mxu1 %v1368_v40 }
 0x128   : > { %1371 = vmatpush3.bf16.msra.mxu1 %v1370_v0  ;;  %v1384_v0 = vpack.c.bf16 (!%p1068_p6), %v713_v62, %v712_v59  ;;  %v752_v59 = vld [vmem:[%s1791_s3 + $0x150] sm:$0xff] (!%p1068_p6) }
 0x129   : > { %v1372_v45 = vpack.c.bf16 %v627_v42, %v626_v44  ;;  %v1242_v46 = vpop.f32.mrb[30].mxu0  ;;  %v741_v42 = vld [vmem:[%s1791_s3 + $0xf8] sm:$0xff] (!%p1068_p6)  ;;  %v742_v44 = vld [vmem:[%s1791_s3 + $0x100] sm:$0xff] (!%p1068_p6)  ;;  %v1444_v62 = vpack.c.bf16 (!%p1068_p6), %v753_v61, %v752_v59 }
 0x12a   : > { %v629_v47 = vmax.f32 %v1242_v46, 0.0  ;;  %v589_v48 = vpop.f32.mrb[31].mxu0  ;;  %1385 = vmatpush3.bf16.msra.mxu0 (!%p1068_p6), %v1384_v0  ;;  %v1426_v43 = vpack.c.bf16 (!%p1068_p6), %v741_v42, %v740_v41  ;;  %v744_v46 = vld [vmem:[%s1791_s3 + $0x110] sm:$0xff] (!%p1068_p6)  ;;  %v755_v0 = vld [vmem:[%s1791_s3 + $0x168] sm:$0xff] (!%p1068_p6) }
 0x12b   : > { %v628_v49 = vmax.f32 %v589_v48, 0.0  ;;  %1373 = vmatprep.subr.bf16.mxu1 %v1372_v45  ;;  %1386 = vmatprep.subr.bf16.mxu0 (!%p1068_p6), %v1473_v60  ;;  %v743_v45 = vld [vmem:[%s1791_s3 + $0x108] sm:$0xff] (!%p1068_p6)  ;;  %v745_v48 = vld [vmem:[%s1791_s3 + $0x118] sm:$0xff] (!%p1068_p6) }
 0x12c   : > { %1375 = vmatpush3.bf16.msra.mxu1 %v1374_v5  ;;  %v728_v5 = vld [vmem:[%s1791_s3 + $0x90] sm:$0xff] (!%p1068_p6) }
 0x12d   : > { %v1376_v50 = vpack.c.bf16 %v629_v47, %v628_v49  ;;  %v1408_v11 = vpack.c.bf16 (!%p1068_p6), %v729_v6, %v728_v5  ;;  %v1429_v47 = vpack.c.bf16 (!%p1068_p6), %v743_v45, %v742_v44  ;;  %v1432_v49 = vpack.c.bf16 (!%p1068_p6), %v745_v48, %v744_v46 }
 0x12e   : > { %1388 = vmatpush3.bf16.msra.mxu0 (!%p1068_p6), %v1387_v7  ;;  %v756_v7 = vld [vmem:[%s1791_s3 + $0x170] sm:$0xff] (!%p1068_p6) }
 0x12f   : > { %1377 = vmatprep.subr.bf16.mxu1 %v1376_v50  ;;  %1389 = vmatprep.subr.bf16.mxu0 (!%p1068_p6), %v1473_v60  ;;  %v746_v50 = vld [vmem:[%s1791_s3 + $0x120] sm:$0xff] (!%p1068_p6) }
 0x130   : > { %1379 = vmatpush3.bf16.msra.mxu1 %v1378_v10  ;;  %v717_v10 = vld [vmem:[%s1791_s3 + $0x38] sm:$0xff] (!%p1068_p6) }
 0x131   : > { %1404 = vmatprep.subr.bf16.mxu1 (!%p1068_p6), %v1473_v60  ;;  %v1390_v14 = vpack.c.bf16 (!%p1068_p6), %v717_v10, %v716_v9 }
 0x133   : > { %698 = vmatmul.mubr.f32.vlgmr.msra.gmra.mrb[0].mxu1 %v631_v51  ;;  %1391 = vmatpush3.bf16.msra.mxu0 (!%p1068_p6), %v1390_v14  ;;  %v747_v51 = vld [vmem:[%s1791_s3 + $0x128] sm:$0xff] (!%p1068_p6)  ;;  %v1071_v14 = vld [vmem:[%s1792_s4 + $0x2] ss:$0 sm:$0xff] (!%p1068_p6) }
 0x134   : > { %1310 = vmatprep.mubr.msk.f32.mxu1 (!%p1068_p6), %vm1474_vm2, %v1475_v63  ;;  %1406 = vmatpush3.bf16.msra.mxu1 (!%p1068_p6), %v1405_v8  ;;  %v757_v8 = vld [vmem:[%s1791_s3 + $0x178] sm:$0xff] (!%p1068_p6) }
 0x135   : > { %1407 = vmatprep.subr.bf16.mxu1 (!%p1068_p6), %v1473_v60  ;;  %1392 = vmatprep.subr.bf16.mxu0 (!%p1068_p6), %v1473_v60  ;;  %v1450_v9 = vpack.c.bf16 (!%p1068_p6), %v757_v8, %v756_v7 }
 0x137   : > { %1394 = vmatpush3.bf16.msra.mxu0 (!%p1068_p6), %v1393_v20 }
 0x138   : > { %1409 = vmatpush3.bf16.msra.mxu1 (!%p1068_p6), %v1408_v11  ;;  %1395 = vmatprep.subr.bf16.mxu0 (!%p1068_p6), %v1473_v60 }
 0x139   : > { %1410 = vmatprep.subr.bf16.mxu1 (!%p1068_p6), %v1473_v60 }
 0x13b   : > { %1397 = vmatpush3.bf16.msra.mxu0 (!%p1068_p6), %v1396_v26 }
 0x13c   : > { %1412 = vmatpush3.bf16.msra.mxu1 (!%p1068_p6), %v1411_v17  ;;  %1398 = vmatprep.subr.bf16.mxu0 (!%p1068_p6), %v1473_v60 }
 0x13d   : > { %1413 = vmatprep.subr.bf16.mxu1 (!%p1068_p6), %v1473_v60 }
 0x13f   : > { %1400 = vmatpush3.bf16.msra.mxu0 (!%p1068_p6), %v1399_v32 }
 0x140   : > { %1415 = vmatpush3.bf16.msra.mxu1 (!%p1068_p6), %v1414_v23  ;;  %1401 = vmatprep.subr.bf16.mxu0 (!%p1068_p6), %v1473_v60 }
 0x141   : > { %1416 = vmatprep.subr.bf16.mxu1 (!%p1068_p6), %v1473_v60 }
 0x143   : > { %1403 = vmatpush3.bf16.msra.mxu0 (!%p1068_p6), %v1402_v38 }
 0x144   : > { %1418 = vmatpush3.bf16.msra.mxu1 (!%p1068_p6), %v1417_v29  ;;  %1428 = vmatprep.subr.bf16.mxu0 (!%p1068_p6), %v1473_v60 }
 0x145   : > { %1419 = vmatprep.subr.bf16.mxu1 (!%p1068_p6), %v1473_v60 }
 0x148   : > { %1421 = vmatpush3.bf16.msra.mxu1 (!%p1068_p6), %v1420_v35 }
 0x149   : > { %1422 = vmatprep.subr.bf16.mxu1 (!%p1068_p6), %v1473_v60 }
 0x14c   : > { %1424 = vmatpush3.bf16.msra.mxu1 (!%p1068_p6), %v1423_v39 }
 0x14d   : > { %1425 = vmatprep.subr.bf16.mxu1 (!%p1068_p6), %v1473_v60 }
 0x150   : > { %1427 = vmatpush3.bf16.msra.mxu1 (!%p1068_p6), %v1426_v43 }
 0x206   : > { %v1139_v52 = vpop.f32.mrb[0].mxu1  ;;  %708 = sbr.rel (%p1068_p6) target bundleno = 1179 (0x49b), region = 48 }
 0x207   : > { %v1140_v54 = vpop.f32.mrb[1].mxu1 }
 0x208   : > { %v1141_v55 = vadd.f32 %v1140_v54, %v1139_v52  ;;  %v1435_v52 = vpack.c.bf16 (!%p1068_p6), %v747_v51, %v746_v50  ;;  %v749_v54 = vld [vmem:[%s1791_s3 + $0x138] sm:$0xff] (!%p1068_p6) }
 0x20a   : > { %v703_v56 = vadd.f32 %v1141_v55, %v630_v53  ;;  %v748_v53 = vld [vmem:[%s1791_s3 + $0x130] sm:$0xff] (!%p1068_p6) }
 0x20b   : > { %v1438_v55 = vpack.c.bf16 (!%p1068_p6), %v749_v54, %v748_v53 }
 0x20c   : > { %704 = vst [vmem:[#allocation2] sm:$0xff] %v703_v56  ;;  %v750_v56 = vld [vmem:[%s1791_s3 + $0x140] sm:$0xff] (!%p1068_p6) }
 0x20d   : > { %v1441_v58 = vpack.c.bf16 %v751_v57, %v750_v56 }
 0x213   : > { %v709_v40 = vld [vmem:[#allocation2] sm:$0xff] }
 0x214   : > { %1276 = vmatmul.mubr.f32.vlgmr.msra.gmra.mrb[0].mxu0 %v709_v40 }
 0x215   : > { %1345 = vmatprep.mubr.msk.f32.mxu0 %vm1474_vm2, %v1475_v63  ;;  %1430 = vmatpush3.bf16.msra.mxu0 %v1429_v47  ;;  %v754_v63 = vld [vmem:[%s1791_s3 + $0x160] sm:$0xff] }
 0x216   : > { %1431 = vmatprep.subr.bf16.mxu0 %v1473_v60  ;;  %v1447_v1 = vpack.c.bf16 %v755_v0, %v754_v63 }
 0x219   : > { %1433 = vmatpush3.bf16.msra.mxu0 %v1432_v49 }
 0x21a   : > { %1434 = vmatprep.subr.bf16.mxu0 %v1473_v60 }
 0x21d   : > { %1436 = vmatpush3.bf16.msra.mxu0 %v1435_v52 }
 0x21e   : > { %1437 = vmatprep.subr.bf16.mxu0 %v1473_v60 }
 0x221   : > { %1439 = vmatpush3.bf16.msra.mxu0 %v1438_v55 }
 0x222   : > { %1440 = vmatprep.subr.bf16.mxu0 %v1473_v60 }
 0x225   : > { %1442 = vmatpush3.bf16.msra.mxu0 %v1441_v58 }
 0x226   : > { %1443 = vmatprep.subr.bf16.mxu0 %v1473_v60 }
 0x229   : > { %1445 = vmatpush3.bf16.msra.mxu0 %v1444_v62 }
 0x22a   : > { %1446 = vmatprep.subr.bf16.mxu0 %v1473_v60 }
 0x22d   : > { %1448 = vmatpush3.bf16.msra.mxu0 %v1447_v1 }
 0x22e   : > { %1449 = vmatprep.subr.bf16.mxu0 %v1473_v60  ;;  %v1070_v60 = vld [vmem:[%s1792_s4 + $0x1] ss:$0 sm:$0xff] }
 0x231   : > { %1451 = vmatpush3.bf16.msra.mxu0 %v1450_v9 }
 0x2e7   : > { %v831_v3 = vpop.f32.mrb[0].mxu0 }
 0x2e8   : > { %v832_v4 = vadd.f32 %v1069_v2, %v831_v3  ;;  %v1277_v5 = vpop.f32.mrb[1].mxu0 }
 0x2ea   : > { %v835_v6 = vmax.f32 %v832_v4, 0.0 }
 0x2ec   : > { %1311 = vmatmul.mubr.f32.vlgmr.msra.gmra.mrb[0].mxu1 %v835_v6 }
 0x3bf   : > { %v906_v10 = vpop.f32.mrb[0].mxu1 }
 0x3c0   : > { %v907_v11 = vadd.f32 %v1070_v60, %v906_v10  ;;  %v1312_v12 = vpop.f32.mrb[1].mxu1 }
 0x3c2   : > { %v910_v13 = vmax.f32 %v907_v11, 0.0 }
 0x3c4   : > { %1346 = vmatmul.mubr.f32.vlgmr.msra.gmra.mrb[2].mxu0 %v910_v13 }
 0x497   : > { %v981_v15 = vpop.f32.mrb[2].mxu0 }
 0x498   : > { %v982_v16 = vadd.f32 %v1071_v14, %v981_v15  ;;  %v1347_v17 = vpop.f32.mrb[3].mxu0 }
 0x49a   : > { %985 = vst [vmem:[%s1793_s5] sm:$0xff] %v982_v16 }
 0x49b PF: > { %s15_s18 = sadd.s32 1, %s1470_s18  }
 0x49c   : > { %p12_p7 = scmp.ge.s32.totalorder %s15_s18, 4  }
 0x49e   :  { %14 = sbr.rel (!%p12_p7) target bundleno = 1 (0x1), region = 77 }

</bundles_post_ra>
